<compile_context>
chip_gen: v7x
topology: tpu7x:2x2x1
jax: 0.10.0
libtpu: 0.0.40
codegen_flags: <defaults>
</compile_context>

<pallas_src>
import jax
import jax.numpy as jnp
from jax.experimental import pallas as pl
from jax.experimental.pallas import tpu as pltpu

# ----------------------------- config ---------------------------------------
B, S = 2, 8                  # batch, sequence length
D = 32                       # dim
MULTIPLE_OF = 64
_hidden = int(2 * (4 * D) / 3)
FFN = MULTIPLE_OF * ((_hidden + MULTIPLE_OF - 1) // MULTIPLE_OF)   # 128
OUT_PAD = 128                # lane-dense output width (>= D, multiple of 128)
TOKEN_TILE = 256             # rows per grid step once the token count is large


def _round_up(x, m):
    return ((x + m - 1) // m) * m


# ------------------------------ the kernel -----------------------------------
def ffn_kernel(x_ref, w13_ref, w2_ref, o_ref):
    x = x_ref[...]                                                   # (T, D) bf16
    # fused up-projection: [w1 | w3] -> (T, 2*FFN), f32 accumulation on the MXU
    up = jnp.dot(x, w13_ref[...], preferred_element_type=jnp.float32)
    gate = up[:, :FFN]                          # w1(x)  (slice on a 128-lane boundary)
    lin = up[:, FFN:]                           # w3(x)
    h = (gate * jax.nn.sigmoid(gate)) * lin     # SiLU(w1 x) * w3 x  (sigmoid -> EUP)
    # down-projection into a lane-dense (T, 128) slab (w2 zero-padded to 128 lanes)
    o_ref[...] = jnp.dot(h.astype(jnp.bfloat16), w2_ref[...],
                         preferred_element_type=jnp.float32)


# ------------------------------ wrapper ---------------------------------------
def feedforward_pallas(x, w13_bf16, w2p_bf16):
    """x: (B, S, D) f32/bf16; w13_bf16: (D, 2*FFN) bf16 pre-fused;
    w2p_bf16: (FFN, OUT_PAD) bf16 pre-padded."""
    Bx, Sx, Dx = x.shape
    n = Bx * Sx
    x2 = x.reshape(n, Dx).astype(jnp.bfloat16)

    # token tiling: tiny inputs -> single grid step; large inputs -> stream tiles
    tile = TOKEN_TILE if n >= TOKEN_TILE else _round_up(n, 8)
    n_pad = _round_up(n, tile)
    if n_pad != n:
        x2 = jnp.pad(x2, ((0, n_pad - n), (0, 0)))
    grid = (n_pad // tile,)

    flops = 2 * n_pad * Dx * (2 * FFN) + 2 * n_pad * FFN * OUT_PAD
    bytes_accessed = (x2.size * 2 + w13_bf16.size * 2 + w2p_bf16.size * 2
                      + n_pad * OUT_PAD * 4)

    out = pl.pallas_call(
        ffn_kernel,
        out_shape=jax.ShapeDtypeStruct((n_pad, OUT_PAD), jnp.float32),
        grid=grid,
        in_specs=[
            pl.BlockSpec((tile, Dx), lambda i: (i, 0)),        # activations stream
            pl.BlockSpec((Dx, 2 * FFN), lambda i: (0, 0)),     # [w1 | w3], resident
            pl.BlockSpec((FFN, OUT_PAD), lambda i: (0, 0)),    # w2 (padded), resident
        ],
        out_specs=pl.BlockSpec((tile, OUT_PAD), lambda i: (i, 0)),
        compiler_params=pltpu.CompilerParams(
            dimension_semantics=("parallel",)),
        cost_estimate=pl.CostEstimate(
            flops=flops, transcendentals=n_pad * FFN,
            bytes_accessed=bytes_accessed),
    )(x2, w13_bf16, w2p_bf16)

    return out[:n, :Dx].reshape(Bx, Sx, Dx)


class FeedForwardPallas:
    """Holds the one-time fused / cast / padded weights (module-init work)."""

    def __init__(self, w1_t, w2_t, w3_t):
        # w1_t/w3_t: (D, FFN) transposed Linear weights; w2_t: (FFN, D)
        self.w13 = jnp.concatenate([w1_t, w3_t], axis=1).astype(jnp.bfloat16)
        self.w2p = jnp.pad(w2_t.astype(jnp.bfloat16),
                           ((0, 0), (0, OUT_PAD - w2_t.shape[1])))

    def __call__(self, x):
        return feedforward_pallas(x, self.w13, self.w2p)


# --------------------------- pure-JAX references --------------------------------
def feedforward_ref_f32(x, w1_t, w2_t, w3_t):
    x = x.astype(jnp.float32)
    a = x @ w1_t
    g = a * jax.nn.sigmoid(a)          # F.silu
    u = x @ w3_t
    return (g * u) @ w2_t


def feedforward_ref_bf16(x, w1_t, w2_t, w3_t):
    """Reference with the same bf16 operand / f32 accumulation numerics."""
    xb = x.astype(jnp.bfloat16)
    w1b, w2b, w3b = (w.astype(jnp.bfloat16) for w in (w1_t, w2_t, w3_t))
    a = jnp.dot(xb, w1b, preferred_element_type=jnp.float32)
    u = jnp.dot(xb, w3b, preferred_element_type=jnp.float32)
    h = (a * jax.nn.sigmoid(a)) * u
    return jnp.dot(h.astype(jnp.bfloat16), w2b, preferred_element_type=jnp.float32)


# --------------------------------- main ----------------------------------------
if __name__ == "__main__":
    key = jax.random.PRNGKey(0)
    kx, k1, k2, k3 = jax.random.split(key, 4)
    x = jax.random.normal(kx, (B, S, D), jnp.float32)
    # transposed Linear weights: (in_features, out_features), y = x @ W == x @ weight.T
    w1_t = jax.random.normal(k1, (D, FFN), jnp.float32) * (1.0 / D ** 0.5)
    w2_t = jax.random.normal(k2, (FFN, D), jnp.float32) * (1.0 / FFN ** 0.5)
    w3_t = jax.random.normal(k3, (D, FFN), jnp.float32) * (1.0 / D ** 0.5)

    ffn = FeedForwardPallas(w1_t, w2_t, w3_t)      # one-time weight fusion / casts
    out = jax.block_until_ready(ffn(x))

    ref_bf16 = feedforward_ref_bf16(x, w1_t, w2_t, w3_t)
    ref_f32 = feedforward_ref_f32(x, w1_t, w2_t, w3_t)
    err_kernel = float(jnp.max(jnp.abs(out - ref_bf16)))   # vs matched-numerics ref
    err_f32 = float(jnp.max(jnp.abs(out - ref_f32)))       # vs full-precision ref
    assert out.shape == (B, S, D), f"bad shape {out.shape}"
    assert err_kernel < 2e-2, f"mismatch vs bf16 ref: max abs err {err_kernel}"
    assert err_f32 < 1e-1, f"mismatch vs f32 ref: max abs err {err_f32}"
    print("KERNEL_OK")
</pallas_src>

<mosaic_0001>
module attributes {stable_mosaic.version = 11 : i64} {
  func.func @ffn_kernel(%arg0: i32, %arg1: memref<16x32xbf16, #tpu.memory_space<vmem>>, %arg2: memref<32x256xbf16, #tpu.memory_space<vmem>>, %arg3: memref<128x128xbf16, #tpu.memory_space<vmem>>, %arg4: memref<16x128xf32, #tpu.memory_space<vmem>>) attributes {dimension_semantics = [#tpu.dimension_semantics<parallel>], iteration_bounds = array<i64: 1>, scalar_prefetch = 0 : i64, scratch_operands = 0 : i64, tpu.core_type = #tpu.core_type<tc>, window_params = [{transform_indices = @transform_0, window_bounds = array<i64: 16, 32>}, {pipeline_mode = #tpu.pipeline_mode<synchronous>, transform_indices = @transform_1, window_bounds = array<i64: 32, 256>}, {pipeline_mode = #tpu.pipeline_mode<synchronous>, transform_indices = @transform_2, window_bounds = array<i64: 128, 128>}, {transform_indices = @transform_3, window_bounds = array<i64: 16, 128>}]} {
    %c0 = arith.constant 0 : index
    %c0_0 = arith.constant 0 : index
    %0 = vector.load %arg1[%c0, %c0_0] : memref<16x32xbf16, #tpu.memory_space<vmem>>, vector<16x32xbf16>
    %c0_1 = arith.constant 0 : index
    %c0_2 = arith.constant 0 : index
    %1 = vector.load %arg2[%c0_1, %c0_2] : memref<32x256xbf16, #tpu.memory_space<vmem>>, vector<32x256xbf16>
    %cst = arith.constant dense<0.000000e+00> : vector<16x256xf32>
    %2 = tpu.matmul %0, %1, %cst {dimension_numbers = #tpu.dot_dimension_numbers<[1], [0], [0], [1], [0, 0, 1, 1], [], []>} : vector<16x32xbf16>, vector<32x256xbf16>, vector<16x256xf32> -> vector<16x256xf32>
    %3 = vector.extract_strided_slice %2 {offsets = [0, 0], sizes = [16, 128], strides = [1, 1]} : vector<16x256xf32> to vector<16x128xf32>
    %4 = vector.extract_strided_slice %2 {offsets = [0, 128], sizes = [16, 128], strides = [1, 1]} : vector<16x256xf32> to vector<16x128xf32>
    %5 = arith.negf %3 : vector<16x128xf32>
    %6 = math.exp %5 : vector<16x128xf32>
    %cst_3 = arith.constant 1.000000e+00 : f32
    %7 = vector.broadcast %cst_3 : f32 to vector<16x128xf32>
    %8 = arith.addf %7, %6 : vector<16x128xf32>
    %9 = arith.divf %7, %8 : vector<16x128xf32>
    %10 = arith.mulf %3, %9 : vector<16x128xf32>
    %11 = arith.mulf %10, %4 : vector<16x128xf32>
    %12 = arith.truncf %11 : vector<16x128xf32> to vector<16x128xbf16>
    %c0_4 = arith.constant 0 : index
    %c0_5 = arith.constant 0 : index
    %13 = vector.load %arg3[%c0_4, %c0_5] : memref<128x128xbf16, #tpu.memory_space<vmem>>, vector<128x128xbf16>
    %cst_6 = arith.constant dense<0.000000e+00> : vector<16x128xf32>
    %14 = tpu.matmul %12, %13, %cst_6 {dimension_numbers = #tpu.dot_dimension_numbers<[1], [0], [0], [1], [0, 0, 1, 1], [], []>} : vector<16x128xbf16>, vector<128x128xbf16>, vector<16x128xf32> -> vector<16x128xf32>
    %c0_7 = arith.constant 0 : index
    %c0_8 = arith.constant 0 : index
    %15 = vector.load %arg4[%c0_7, %c0_8] : memref<16x128xf32, #tpu.memory_space<vmem>>, vector<16x128xf32>
    tpu.vector_store %arg4[%c0_7, %c0_8], %14 {strides = array<i32>} : memref<16x128xf32, #tpu.memory_space<vmem>>, vector<16x128xf32>,
    return
  }
  func.func @transform_0(%arg0: i32) -> (i32, i32) {
    %c0_i32 = arith.constant 0 : i32
    %c0_i32_0 = arith.constant 0 : i32
    return %arg0, %c0_i32 : i32, i32
  }
  func.func @transform_1(%arg0: i32) -> (i32, i32) {
    %c0_i32 = arith.constant 0 : i32
    %c0_i32_0 = arith.constant 0 : i32
    %c0_i32_1 = arith.constant 0 : i32
    return %c0_i32, %c0_i32_0 : i32, i32
  }
  func.func @transform_2(%arg0: i32) -> (i32, i32) {
    %c0_i32 = arith.constant 0 : i32
    %c0_i32_0 = arith.constant 0 : i32
    %c0_i32_1 = arith.constant 0 : i32
    return %c0_i32, %c0_i32_0 : i32, i32
  }
  func.func @transform_3(%arg0: i32) -> (i32, i32) {
    %c0_i32 = arith.constant 0 : i32
    %c0_i32_0 = arith.constant 0 : i32
    return %arg0, %c0_i32 : i32, i32
  }
}

</mosaic_0001>

<bundles_post_ra>
// kernel: tpu_custom_call.1
= control target key start
LH: loop header
LB: loop body
LE: loop exit
PB: predicated region body
PF: predicated region fallthrough
CT: control target
= control target key end

     0   :  { %8 = vsyncpa [#allocation3], 0  ;;  %s535_s0 = inlined_call_operand.hbm [shape: bf16[16,32], index: 0, kind: input, shape index: {}]   ;;  %s536_s1 = inlined_call_operand.hbm [shape: bf16[32,256], index: 1, kind: input, shape index: {}]   ;;  %s537_s2 = inlined_call_operand.hbm [shape: bf16[128,128], index: 2, kind: input, shape index: {}]   ;;  %s538_s3 = inlined_call_operand.hbm [shape: f32[16,128], index: 3, kind: output, shape index: {}]  }
   0x1   :  { %9 = vsyncpa [#allocation6], 0 }
   0x2   :  { %10 = vsyncpa [#allocation4], 0  ;;  %s450_s12 = smov [#allocation5]   ;;  %s356_s16 = scalar_lea.hbm %s536_s1, 512 }
   0x3   :  { %s28_s13 = sshll.u32 %s450_s12, 4  ;;  %p357_p0 = scmp.ne.s32.totalorder %s536_s1, %s356_s16  ;;  %s29_s13 = int_to_ptr.vmem [resolvable:$true] %s28_s13 }
   0x4   :  { %p360_p1 = scmp.lt.u32.totalorder %s356_s16, %s536_s1 }
   0x6   :  { %p362_p2 = pnand %p360_p1, %p357_p0 }
   0x8   :  { %365 = shalt.err (!%p362_p2)
}
   0x9   :  { %s366_s21 = scalar_lea.vmem %s29_s13, 512  ;;  %p371_p4 = scmp.lt.s32.totalorder %s29_s13, %s29_s13 }
   0xa   :  { %p367_p3 = scmp.ne.s32.totalorder %s29_s13, %s366_s21  ;;  %p372_p5 = scmp.lt.s32.totalorder %s366_s21, %s366_s21 }
   0xc   :  { %p373_p6 = por %p372_p5, %p371_p4 }
   0xe   :  { %p374_p7 = pnand %p373_p6, %p367_p3 }
  0x10   :  { %377 = shalt.err (!%p374_p7)
}
  0x11   :  { %s451_s22 = smov 128   ;;  %s452_s23 = smov 8  }
  0x12   :  { %34 = dma.hbm_to_vmem [thread:$0]  %s536_s1, 512, %s29_s13, [#allocation6], %s451_s22, %s451_s22, %s452_s23  }
  0x13   :  { %s453_s26 = smov [#allocation2]   ;;  %s378_s30 = scalar_lea.hbm %s535_s0, 128 }
  0x14   :  { %s16_s27 = sshll.u32 %s453_s26, 4  ;;  %p379_p8 = scmp.ne.s32.totalorder %s535_s0, %s378_s30  ;;  %s17_s27 = int_to_ptr.vmem [resolvable:$true] %s16_s27 }
  0x15   :  { %p382_p9 = scmp.lt.u32.totalorder %s378_s30, %s535_s0 }
  0x17   :  { %p384_p10 = pnand %p382_p9, %p379_p8 }
  0x19   :  { %387 = shalt.err (!%p384_p10)
}
  0x1a   :  { %s388_s8 = scalar_lea.vmem %s17_s27, 128  ;;  %p393_p12 = scmp.lt.s32.totalorder %s17_s27, %s17_s27 }
  0x1b   :  { %p389_p11 = scmp.ne.s32.totalorder %s17_s27, %s388_s8  ;;  %p394_p13 = scmp.lt.s32.totalorder %s388_s8, %s388_s8 }
  0x1d   :  { %p395_p0 = por %p394_p13, %p393_p12 }
  0x1f   :  { %p396_p1 = pnand %p395_p0, %p389_p11 }
  0x21   :  { %399 = shalt.err (!%p396_p1)
}
  0x22   :  { %s454_s1 = smov 64   ;;  %s455_s9 = smov 4  }
  0x23   :  { %22 = dma.hbm_to_vmem [thread:$0]  %s535_s0, 128, %s17_s27, [#allocation3], %s454_s1, %s454_s1, %s455_s9  }
  0x24   :  { %s456_s12 = smov [#allocation7]   ;;  %s400_s16 = scalar_lea.hbm %s537_s2, 1024 }
  0x25   :  { %s40_s13 = sshll.u32 %s456_s12, 4  ;;  %p401_p2 = scmp.ne.s32.totalorder %s537_s2, %s400_s16  ;;  %s41_s13 = int_to_ptr.vmem [resolvable:$true] %s40_s13 }
  0x26   :  { %p404_p3 = scmp.lt.u32.totalorder %s400_s16, %s537_s2 }
  0x28   :  { %p406_p4 = pnand %p404_p3, %p401_p2 }
  0x2a   :  { %409 = shalt.err (!%p406_p4)
}
  0x2b   :  { %s410_s21 = scalar_lea.vmem %s41_s13, 1024  ;;  %p415_p6 = scmp.lt.s32.totalorder %s41_s13, %s41_s13 }
  0x2c   :  { %p411_p5 = scmp.ne.s32.totalorder %s41_s13, %s410_s21  ;;  %p416_p7 = scmp.lt.s32.totalorder %s410_s21, %s410_s21 }
  0x2e   :  { %p417_p8 = por %p416_p7, %p415_p6 }
  0x30   :  { %p418_p9 = pnand %p417_p8, %p411_p5 }
  0x32   :  { %421 = shalt.err (!%p418_p9)
}
  0x33   :  { %46 = dma.hbm_to_vmem [thread:$0]  %s537_s2, 1024, %s41_s13, [#allocation6], %s454_s1, %s454_s1, %s455_s9  }
  0x34   :  { %444 = dma.done.wait [#allocation3], 128  }
  0x35   :  { %445 = vsyncadd [#allocation3], 4294967168 }
  0x36   :  { %446 = dma.done.wait [#allocation6], 1536  }
  0x37   :  { %447 = vsyncadd [#allocation6], 4294965760  ;;  %v457_v0 = vmov 0   ;;  %v333_v1 = vld [vmem:[#allocation5 + $0x4] ss:$8 sps:$4 sm:$0xff]   ;;  %vm88_vm0 = vcmask 261120  }
  0x38   :  { %124 = vmatprep.mubr.bf16.mxu0 %v457_v0  ;;  %v335_v2 = vld [vmem:[#allocation5] ss:$8 sps:$4 sm:$0xff]   ;;  %92 = vmatprep.subr.bf16.mxu0 %v333_v1  ;;  %v336_v3 = vld [vmem:[#allocation5 + $0x14] ss:$8 sps:$4 sm:$0xff]   ;;  %v338_v4 = vld [vmem:[#allocation5 + $0x10] ss:$8 sps:$4 sm:$0xff]  }
  0x39   :  { %93 = vmatpush1.bf16.msra.mxu0 %v335_v2  ;;  %v339_v5 = vld [vmem:[#allocation2] sm:$0xff]   ;;  %v340_v6 = vld [vmem:[#allocation7] sm:$0xff]   ;;  %v458_v7 = vmov 0.0   ;;  %v341_v8 = vld [vmem:[#allocation7 + $0x8] sm:$0xff]   ;;  %vm459_vm1 = vmmov 0   ;;  %s460_s2 = smov [#allocation8]  }
  0x3a   :  { %94 = vmatprep.subr.bf16.mxu0 %v336_v3  ;;  %302 = vmatprep.subr.bf16.mxu1 %v458_v7  ;;  %v342_v9 = vld [vmem:[#allocation7 + $0x10] sm:$0xff]   ;;  %v343_v10 = vld [vmem:[#allocation7 + $0x18] sm:$0xff]   ;;  %v344_v11 = vld [vmem:[#allocation7 + $0x20] sm:$0xff]   ;;  %s264_s25 = sshll.u32 %s460_s2, 4  ;;  %s265_s25 = int_to_ptr.vmem [resolvable:$true] %s264_s25 }
  0x3b   :  { %303 = vmatpush3.bf16.msra.mxu1 %v340_v6  ;;  %v345_v12 = vld [vmem:[#allocation7 + $0x28] sm:$0xff]   ;;  %v346_v13 = vld [vmem:[#allocation7 + $0x30] sm:$0xff]   ;;  %v347_v14 = vld [vmem:[#allocation7 + $0x38] sm:$0xff]   ;;  %318 = vmatprep.mubr.msk.bf16.mxu1 %vm459_vm1, %v458_v7  ;;  %s422_s26 = scalar_lea.vmem %s265_s25, 256  ;;  %p427_p11 = scmp.lt.s32.totalorder %s265_s25, %s265_s25 }
  0x3c   :  { %304 = vmatprep.subr.bf16.mxu1 %v458_v7  ;;  %p423_p10 = scmp.ne.s32.totalorder %s265_s25, %s422_s26  ;;  %p428_p12 = scmp.lt.s32.totalorder %s422_s26, %s422_s26 }
  0x3d   :  { %95 = vmatpush1.bf16.msra.mxu0 %v338_v4 }
  0x3e   :  { %p429_p13 = por %p428_p12, %p427_p11 }
  0x3f   :  { %305 = vmatpush3.bf16.msra.mxu1 %v341_v8 }
  0x40   :  { %282 = vmatmul.mubr.msk.bf16.vlgmr.msra.gmra.mrb[0].mxu0 %vm88_vm0, %v339_v5  ;;  %306 = vmatprep.subr.bf16.mxu1 %v458_v7  ;;  %p430_p0 = pnand %p429_p13, %p423_p10 }
  0x43   :  { %307 = vmatpush3.bf16.msra.mxu1 %v342_v9 }
  0x44   :  { %308 = vmatprep.subr.bf16.mxu1 %v458_v7 }
  0x47   :  { %309 = vmatpush3.bf16.msra.mxu1 %v343_v10 }
  0x48   :  { %310 = vmatprep.subr.bf16.mxu1 %v458_v7 }
  0x4b   :  { %311 = vmatpush3.bf16.msra.mxu1 %v344_v11 }
  0x4c   :  { %312 = vmatprep.subr.bf16.mxu1 %v458_v7 }
  0x4f   :  { %313 = vmatpush3.bf16.msra.mxu1 %v345_v12 }
  0x50   :  { %314 = vmatprep.subr.bf16.mxu1 %v458_v7 }
  0x53   :  { %315 = vmatpush3.bf16.msra.mxu1 %v346_v13 }
  0x54   :  { %316 = vmatprep.subr.bf16.mxu1 %v458_v7 }
  0x57   :  { %317 = vmatpush3.bf16.msra.mxu1 %v347_v14 }
 0x113   :  { %v126_v15 = vpop.f32.mrb[0].mxu0 }
 0x114   :  { %v283_v16 = vmul.f32 -1.442695, %v126_v15  ;;  %v128_v17 = vpop.f32.mrb[1].mxu0 }
 0x115   :  { %v130_v18 = vpop.f32.mrb[2].mxu0 }
 0x116   :  { %348 = vpow2.f32 %v283_v16  ;;  %v284_v19 = vmul.f32 -1.442695, %v130_v18  ;;  %v132_v20 = vpop.f32.mrb[3].mxu0 }
 0x118   :  { %350 = vpow2.f32 %v284_v19 }
 0x120   :  { %v349_v21 = vpop.eup %348 }
 0x121   :  { %v141_v22 = vadd.f32 1.0, %v349_v21 }
 0x122   :  { %v351_v23 = vpop.eup %350 }
 0x123   :  { %352 = vrcp.f32 %v141_v22  ;;  %v142_v24 = vadd.f32 1.0, %v351_v23 }
 0x125   :  { %354 = vrcp.f32 %v142_v24 }
 0x12d   :  { %v353_v25 = vpop.eup %352 }
 0x12e   :  { %v147_v26 = vmul.f32 %v353_v25, %v126_v15 }
 0x12f   :  { %v355_v27 = vpop.eup %354 }
 0x130   :  { %v149_v28 = vmul.f32 %v147_v26, %v128_v17  ;;  %v148_v29 = vmul.f32 %v355_v27, %v130_v18 }
 0x132   :  { %v150_v30 = vmul.f32 %v148_v29, %v132_v20 }
 0x134   :  { %v151_v31 = vpack.c.bf16 %v150_v30, %v149_v28 }
 0x136   :  { %319 = vmatmul.mubr.bf16.vlgmr.msra.gmra.mrb[0].mxu1 %v151_v31 }
 0x209   :  { %v250_v32 = vpop.f32.mrb[0].mxu1 }
 0x20a   :  { %257 = vst [vmem:[#allocation8] sm:$0xff] %v250_v32  ;;  %v320_v33 = vpop.f32.mrb[1].mxu1 }
 0x20b   :  { %v253_v34 = vpop.f32.mrb[2].mxu1 }
 0x20c   :  { %258 = vst [vmem:[#allocation8 + $0x8] sm:$0xff] %v253_v34  ;;  %v321_v35 = vpop.f32.mrb[3].mxu1 }
 0x20d   :  { %433 = shalt.err (!%p430_p0)
}
 0x20e   :  { %s434_s29 = scalar_lea.hbm %s538_s3, 256 }
 0x20f   :  { %p435_p1 = scmp.ne.s32.totalorder %s538_s3, %s434_s29  ;;  %p438_p2 = scmp.lt.u32.totalorder %s434_s29, %s538_s3 }
 0x211   :  { %p440_p3 = pnand %p438_p2, %p435_p1 }
 0x213   :  { %443 = shalt.err (!%p440_p3)
}
 0x214   :  { %270 = dma.vmem_to_hbm [thread:$0]  %s265_s25, 256, %s538_s3, [#allocation4], %s451_s22, %s451_s22, %s452_s23  }
 0x215   :  { %448 = dma.done.wait [#allocation4], 256  }
 0x216   :  { %449 = vsyncadd [#allocation4], 4294967040 }
 0x217   :  { %274 = vsyncpa [#allocation3], 1 }
 0x218   :  { %275 = vsyncpa [#allocation6], 1 }
 0x219   :  { %276 = vsyncpa [#allocation4], 1 }

</bundles_post_ra>
